<compile_context>
chip_gen: v6e
topology: v6e:2x2x1
jax: 0.10.0
libtpu: 0.0.40
codegen_flags: <defaults>
</compile_context>

<pallas_src>
import functools

import jax
import jax.numpy as jnp
from jax.experimental import pallas as pl
from jax.experimental.pallas import tpu as pltpu

GAMMA = 1.5
ALPHA = 0.25
LANE = 128
SUBLANE = 8
PAD_SENTINEL = -100.0  # pred sentinel for padded elements (true padded with 0) -> loss ~ 0


def _round_up(x, m):
    return (x + m - 1) // m * m


def _qfocal_kernel(pred_ref, true_ref, acc_ref, *, gamma, alpha):
    step = pl.program_id(1)

    @pl.when(step == 0)
    def _():
        acc_ref[...] = jnp.zeros_like(acc_ref)

    pred = pred_ref[...].astype(jnp.float32)   # (1, block_rows, LANE)
    true = true_ref[...].astype(jnp.float32)

    # Share exp(-|pred|) between the BCE term and the sigmoid (EUP slot is scarce).
    e = jnp.exp(-jnp.abs(pred))
    bce = jnp.maximum(pred, 0.0) - pred * true + jnp.log1p(e)

    # sigmoid(pred) = (pred >= 0 ? 1 : e) / (1 + e)   -- exact, reuses e
    pred_prob = jnp.where(pred >= 0.0, 1.0, e) / (1.0 + e)

    alpha_factor = true * alpha + (1.0 - true) * (1.0 - alpha)
    d = jnp.abs(true - pred_prob)
    if gamma == 1.5:
        mod = d * jnp.sqrt(d)          # cheaper than pow; avoids log(0) when d == 0
    else:
        mod = d ** gamma

    loss = bce * alpha_factor * mod    # (1, block_rows, LANE)

    # Reduce block_rows -> SUBLANE with pure VALU vreg adds (layout-preserving reshape,
    # no per-step XLU cross-lane reduce, no serializing scalar read-modify-write).
    br = loss.shape[1]
    partial = loss.reshape(br // SUBLANE, SUBLANE, LANE).sum(axis=0)
    acc_ref[0] += partial


def qfocal_loss(pred, true, gamma=GAMMA, alpha=ALPHA, reduction="mean",
                block_rows=1024, num_parallel=2):
    """QFocalLoss(BCEWithLogitsLoss(reduction='mean')).forward(pred, true)."""
    assert pred.shape == true.shape
    n_elems = pred.size
    assert n_elems > 0

    # Tile geometry: num_parallel slices x steps x (block_rows, LANE) tiles.
    block_rows = _round_up(block_rows, SUBLANE)
    rows_needed = pl.cdiv(n_elems, LANE)
    rows_per_slice_min = max(1, pl.cdiv(rows_needed, num_parallel))
    br = min(block_rows, max(SUBLANE, _round_up(rows_per_slice_min, SUBLANE)))
    rows_per_slice = _round_up(rows_per_slice_min, br)
    steps = rows_per_slice // br
    total = num_parallel * rows_per_slice * LANE

    # Stream inputs in their native dtype; pad only the minimal remainder with a
    # sentinel instead of carrying a full-size mask array.
    flat_p = jnp.ravel(pred)
    flat_t = jnp.ravel(true)
    n_pad = total - n_elems
    if n_pad:
        flat_p = jnp.pad(flat_p, (0, n_pad), constant_values=PAD_SENTINEL)
        flat_t = jnp.pad(flat_t, (0, n_pad))  # true = 0 on the padded tail

    p3 = flat_p.reshape(num_parallel, rows_per_slice, LANE)
    t3 = flat_t.reshape(num_parallel, rows_per_slice, LANE)

    in_blk = pl.BlockSpec((1, br, LANE), lambda p, i: (p, i, 0))
    out_blk = pl.BlockSpec((1, SUBLANE, LANE), lambda p, i: (p, 0, 0))

    partials = pl.pallas_call(
        functools.partial(_qfocal_kernel, gamma=gamma, alpha=alpha),
        out_shape=jax.ShapeDtypeStruct((num_parallel, SUBLANE, LANE), jnp.float32),
        grid_spec=pltpu.PrefetchScalarGridSpec(
            num_scalar_prefetch=0,
            grid=(num_parallel, steps),
            in_specs=[in_blk, in_blk],
            out_specs=out_blk,
        ),
        compiler_params=pltpu.CompilerParams(
            dimension_semantics=("parallel", "arbitrary")),
    )(p3, t3)

    total_loss = jnp.sum(partials)  # single cross-lane reduce, outside the hot loop
    if reduction == "mean":
        return total_loss / jnp.float32(n_elems)
    elif reduction == "sum":
        return total_loss
    else:
        # TODO(synk): 'none' reduction (per-element loss map) not wired here.
        raise NotImplementedError("reduction='none' not implemented")


def _reference(pred, true, gamma=GAMMA, alpha=ALPHA):
    pred = pred.astype(jnp.float32)
    true = true.astype(jnp.float32)
    bce = (jnp.maximum(pred, 0.0) - pred * true
           + jnp.log1p(jnp.exp(-jnp.abs(pred))))
    p = jax.nn.sigmoid(pred)
    loss = bce * (true * alpha + (1 - true) * (1 - alpha)) * jnp.abs(true - p) ** gamma
    return jnp.mean(loss)


if __name__ == "__main__":
    key = jax.random.PRNGKey(0)
    k1, k2 = jax.random.split(key)
    # NCHW-shaped logits and (soft) targets, as produced by a detection head.
    pred = jax.random.normal(k1, (2, 4, 16, 16), dtype=jnp.float32)
    true = jax.random.uniform(k2, (2, 4, 16, 16), dtype=jnp.float32)

    out = qfocal_loss(pred, true)
    out = jax.block_until_ready(out)

    ref = _reference(pred, true)
    assert jnp.allclose(out, ref, rtol=1e-4, atol=1e-6), (out, ref)

    print("KERNEL_OK")
</pallas_src>

<mosaic_0001>
module attributes {stable_mosaic.version = 11 : i64} {
  func.func @_qfocal_kernel(%arg0: i32, %arg1: i32, %arg2: memref<1x8x128xf32, #tpu.memory_space<vmem>>, %arg3: memref<1x8x128xf32, #tpu.memory_space<vmem>>, %arg4: memref<1x8x128xf32, #tpu.memory_space<vmem>>) attributes {dimension_semantics = [#tpu.dimension_semantics<parallel>, #tpu.dimension_semantics<arbitrary>], iteration_bounds = array<i64: 2, 1>, scalar_prefetch = 0 : i64, scratch_operands = 0 : i64, tpu.core_type = #tpu.core_type<tc>, window_params = [{transform_indices = @transform_0, window_bounds = array<i64: 1, 8, 128>}, {transform_indices = @transform_1, window_bounds = array<i64: 1, 8, 128>}, {transform_indices = @transform_2, window_bounds = array<i64: 1, 8, 128>}]} {
    %c0_i32 = arith.constant 0 : i32
    %0 = arith.cmpi eq, %arg1, %c0_i32 : i32
    %1 = arith.extui %0 : i1 to i32
    %c0_i32_0 = arith.constant 0 : i32
    %2 = arith.cmpi ne, %1, %c0_i32_0 : i32
    scf.if %2 {
      %cst_20 = arith.constant 0.000000e+00 : f32
      %42 = vector.broadcast %cst_20 : f32 to vector<1x8x128xf32>
      %c0_21 = arith.constant 0 : index
      %c0_22 = arith.constant 0 : index
      %c0_23 = arith.constant 0 : index
      %43 = vector.load %arg4[%c0_21, %c0_22, %c0_23] : memref<1x8x128xf32, #tpu.memory_space<vmem>>, vector<1x8x128xf32>
      tpu.vector_store %arg4[%c0_21, %c0_22, %c0_23], %42 {strides = array<i32>} : memref<1x8x128xf32, #tpu.memory_space<vmem>>, vector<1x8x128xf32>,
    } else {
    }
    %c0 = arith.constant 0 : index
    %c0_1 = arith.constant 0 : index
    %c0_2 = arith.constant 0 : index
    %3 = vector.load %arg2[%c0, %c0_1, %c0_2] : memref<1x8x128xf32, #tpu.memory_space<vmem>>, vector<1x8x128xf32>
    %c0_3 = arith.constant 0 : index
    %c0_4 = arith.constant 0 : index
    %c0_5 = arith.constant 0 : index
    %4 = vector.load %arg3[%c0_3, %c0_4, %c0_5] : memref<1x8x128xf32, #tpu.memory_space<vmem>>, vector<1x8x128xf32>
    %5 = math.absf %3 : vector<1x8x128xf32>
    %cst = arith.constant 0.000000e+00 : f32
    %6 = vector.broadcast %cst : f32 to vector<1x8x128xf32>
    %7 = arith.subf %6, %5 : vector<1x8x128xf32>
    %8 = math.exp %7 : vector<1x8x128xf32>
    %cst_6 = arith.constant 0.000000e+00 : f32
    %9 = vector.broadcast %cst_6 : f32 to vector<1x8x128xf32>
    %10 = arith.maximumf %3, %9 : vector<1x8x128xf32>
    %11 = arith.mulf %3, %4 : vector<1x8x128xf32>
    %12 = arith.subf %10, %11 : vector<1x8x128xf32>
    %13 = math.log1p %8 : vector<1x8x128xf32>
    %14 = arith.addf %12, %13 : vector<1x8x128xf32>
    %cst_7 = arith.constant 0.000000e+00 : f32
    %15 = vector.broadcast %cst_7 : f32 to vector<1x8x128xf32>
    %16 = arith.cmpf oge, %3, %15 : vector<1x8x128xf32>
    %cst_8 = arith.constant 1.000000e+00 : f32
    %17 = vector.broadcast %cst_8 : f32 to vector<1x8x128xf32>
    %18 = arith.select %16, %17, %8 : vector<1x8x128xi1>, vector<1x8x128xf32>
    %cst_9 = arith.constant 1.000000e+00 : f32
    %19 = vector.broadcast %cst_9 : f32 to vector<1x8x128xf32>
    %20 = arith.addf %19, %8 : vector<1x8x128xf32>
    %21 = arith.divf %18, %20 : vector<1x8x128xf32>
    %cst_10 = arith.constant 2.500000e-01 : f32
    %22 = vector.broadcast %cst_10 : f32 to vector<1x8x128xf32>
    %23 = arith.mulf %4, %22 : vector<1x8x128xf32>
    %cst_11 = arith.constant 1.000000e+00 : f32
    %24 = vector.broadcast %cst_11 : f32 to vector<1x8x128xf32>
    %25 = arith.subf %24, %4 : vector<1x8x128xf32>
    %cst_12 = arith.constant 7.500000e-01 : f32
    %26 = vector.broadcast %cst_12 : f32 to vector<1x8x128xf32>
    %27 = arith.mulf %25, %26 : vector<1x8x128xf32>
    %28 = arith.addf %23, %27 : vector<1x8x128xf32>
    %29 = arith.subf %4, %21 : vector<1x8x128xf32>
    %30 = math.absf %29 : vector<1x8x128xf32>
    %31 = math.sqrt %30 : vector<1x8x128xf32>
    %32 = arith.mulf %30, %31 : vector<1x8x128xf32>
    %33 = arith.mulf %14, %28 : vector<1x8x128xf32>
    %34 = arith.mulf %33, %32 : vector<1x8x128xf32>
    %cst_13 = arith.constant dense<0.000000e+00> : vector<8x128xf32>
    %35 = vector.multi_reduction <add>, %34, %cst_13 [0] : vector<1x8x128xf32> to vector<8x128xf32>
    %c0_14 = arith.constant 0 : index
    %c0_15 = arith.constant 0 : index
    %c0_16 = arith.constant 0 : index
    %36 = vector.load %arg4[%c0_14, %c0_15, %c0_16] : memref<1x8x128xf32, #tpu.memory_space<vmem>>, vector<1x8x128xf32>
    %37 = vector.shape_cast %36 : vector<1x8x128xf32> to vector<8x128xf32>
    %38 = arith.addf %37, %35 : vector<8x128xf32>
    %c0_17 = arith.constant 0 : index
    %c0_18 = arith.constant 0 : index
    %c0_19 = arith.constant 0 : index
    %39 = vector.load %arg4[%c0_17, %c0_18, %c0_19] : memref<1x8x128xf32, #tpu.memory_space<vmem>>, vector<1x8x128xf32>
    %40 = vector.shape_cast %39 : vector<1x8x128xf32> to vector<8x128xf32>
    %41 = vector.shape_cast %38 : vector<8x128xf32> to vector<1x8x128xf32>
    tpu.vector_store %arg4[%c0_17, %c0_18, %c0_19], %41 {strides = array<i32>} : memref<1x8x128xf32, #tpu.memory_space<vmem>>, vector<1x8x128xf32>,
    return
  }
  func.func @transform_0(%arg0: i32, %arg1: i32) -> (i32, i32, i32) {
    %c0_i32 = arith.constant 0 : i32
    %c0_i32_0 = arith.constant 0 : i32
    return %arg0, %arg1, %c0_i32 : i32, i32, i32
  }
  func.func @transform_1(%arg0: i32, %arg1: i32) -> (i32, i32, i32) {
    %c0_i32 = arith.constant 0 : i32
    %c0_i32_0 = arith.constant 0 : i32
    return %arg0, %arg1, %c0_i32 : i32, i32, i32
  }
  func.func @transform_2(%arg0: i32, %arg1: i32) -> (i32, i32, i32) {
    %c0_i32 = arith.constant 0 : i32
    %c0_i32_0 = arith.constant 0 : i32
    %c0_i32_1 = arith.constant 0 : i32
    return %arg0, %c0_i32, %c0_i32_0 : i32, i32, i32
  }
}

</mosaic_0001>

<bundles_post_ra>
// kernel: tpu_custom_call.1
= control target key start
LH: loop header
LB: loop body
LE: loop exit
PB: predicated region body
PF: predicated region fallthrough
CT: control target
= control target key end

     0   :  { %7 = vsyncpa [#allocation3], 0  ;;  %s798_s0 = inlined_call_operand.hbm [shape: f32[2,8,128], index: 0, kind: input, shape index: {}]   ;;  %s799_s1 = inlined_call_operand.hbm [shape: f32[2,8,128], index: 1, kind: input, shape index: {}]   ;;  %s800_s2 = inlined_call_operand.hbm [shape: f32[2,8,128], index: 2, kind: output, shape index: {}]  }
   0x1   :  { %9 = vsyncpa [#allocation3 + $0x1], 0 }
   0x2   :  { %10 = vsyncpa [#allocation6], 0 }
   0x3   :  { %12 = vsyncpa [#allocation6 + $0x1], 0 }
   0x4   :  { %13 = vsyncpa [#allocation4], 0 }
   0x5   :  { %15 = vsyncpa [#allocation4 + $0x1], 0  ;;  %s632_s9 = smov 0   ;;  %s634_s10 = smov 0  }
   0x6   :  { %s636_s11 = smov 0   ;;  %s638_s12 = smov 0  }
   0x7   :  { %s640_s13 = smov 0   ;;  %s642_s14 = smov 0  }
   0x8 LB: > { %s380_s15 = sadd.s32 4294967295, %s612_s14   ;;  %s381_s16 = sadd.s32 4294967294, %s612_s14   ;;  %s612_s14 = sphi %s642_s14, %s21_s14   ;;  %s608_s13 = sphi %s640_s13, %s812_s13   ;;  %s604_s12 = sphi %s638_s12, %s811_s12   ;;  %s600_s11 = sphi %s636_s11, %s810_s11   ;;  %s596_s10 = sphi %s634_s10, %s809_s10   ;;  %s592_s9 = sphi %s632_s9, %s808_s9  }
   0x9   : > { %s33_s17 = sadd.s32 1, %s608_s13  ;;  %s42_s18 = sadd.s32 1, %s600_s11 }
   0xa   : > { %p35_p0 = scmp.ge.s32.totalorder %s33_s17, 2  ;;  %p49_p1 = scmp.ne.s32.totalorder %s600_s11, %s596_s10 }
   0xb   : > { %p50_p2 = scmp.eq.s32.totalorder %s612_s14, 0  ;;  %p55_p3 = scmp.ne.s32.totalorder %s596_s10, %s592_s9 }
   0xc   : > { %s814_s17 = smov (%p35_p0, %s33_s17), 0  ;;  %p56_p5 = scmp.eq.s32.totalorder %s380_s15, 0 }
   0xd   : > { %p673_p4 = por %p50_p2, %p49_p1  ;;  %s37_s20 = ssub.s32 %s608_s13, %s814_s17 }
   0xe   : > { %p107_p6 = scmp.eq.s32.totalorder %s380_s15, 1  ;;  %p40_p7 = scmp.eq.s32.totalorder %s37_s20, 0 }
   0xf   : > { %p679_p8 = por %p56_p5, %p55_p3  ;;  %p113_p10 = scmp.eq.s32.totalorder %s381_s16, 1 }
  0x10   : > { %p683_p9 = por %p107_p6, %p49_p1  ;;  %p413_p13 = scmp.lt.s32.totalorder %s612_s14, 2 }
  0x11   : > { %s688_s23 = scalar_select %p40_p7, %s600_s11, %s42_s18  }
  0x12   : > { %p690_p11 = por %p113_p10, %p55_p3  ;;  %s697_s25 = sand.u32 1, %s600_s11  }
  0x13   : > { %s384_s26 = sshll.u32 %s697_s25, 3  ;;  %s385_s27 = sshll.u32 %s608_s13, 7 }
  0x14   : > { %s143_s30 = scalar_lea.hbm %s798_s0, %s385_s27  ;;  %s137_s3 = scalar_lea.vmem [#allocation2], %s384_s26 }
  0x15   : > { %s145_s4 = sshll.u32 %s137_s3, 4  ;;  %p706_p0 = pnand %p413_p13, %p673_p4  ;;  %s146_s4 = int_to_ptr.vmem [resolvable:$true] %s145_s4 }
  0x16   : > { %p388_p1 = scmp.ge.s32.totalorder %s612_s14, 1  ;;  %p169_p2 = scmp.lt.s32.totalorder %s612_s14, 3 }
  0x17   : > { %s134_s6 = scalar_lea.sflag [#allocation3], %s697_s25  ;;  %p474_p3 = pneg %p706_p0 }
  0x18   : > { %s485_s7 = scalar_lea.vmem %s146_s4, 128  ;;  %s614_s8 = smov [#allocation2]  }
  0x19   : > { %p486_p5 = scmp.ne.s32.totalorder %s146_s4, %s485_s7  ;;  %s490_s15 = sshll.u32 %s614_s8, 4  ;;  %s491_s15 = int_to_ptr.vmem [resolvable:$false] %s490_s15 }
  0x1a   : > { %s492_s16 = scalar_lea.vmem %s491_s15, 256  ;;  %p493_p4 = scmp.lt.s32.totalorder %s146_s4, %s491_s15 }
  0x1b   : > { %p488_p6 = pnand %p486_p5, %p474_p3  ;;  %p494_p10 = scmp.lt.s32.totalorder %s492_s16, %s485_s7 }
  0x1d   : > { %p489_p7 = pneg %p488_p6  ;;  %p495_p13 = por %p494_p10, %p493_p4 }
  0x1f   : > { %p496_p12 = pnand %p495_p13, %p489_p7 }
  0x21   : > { %499 = shalt.err (!%p496_p12)
}
  0x22   : > { %405 = dma.hbm_to_vmem [thread:$0]  (!%p706_p0), %s143_s30, 128, %s146_s4, %s134_s6  }
  0x23   : > { %p724_p5 = pnand %p388_p1, %p169_p2  ;;  %s162_s28 = scalar_lea.hbm %s799_s1, %s385_s27 }
  0x24   : > { %s156_s29 = scalar_lea.vmem [#allocation5], %s384_s26  ;;  %s153_s7 = scalar_lea.sflag [#allocation6], %s697_s25 }
  0x25   : > { %s164_s3 = sshll.u32 %s156_s29, 4  ;;  %s615_s30 = smov [#allocation5]   ;;  %s165_s3 = int_to_ptr.vmem [resolvable:$true] %s164_s3 }
  0x26   : > { %s513_s8 = scalar_lea.vmem %s165_s3, 128  ;;  %s518_s4 = sshll.u32 %s615_s30, 4  ;;  %s519_s4 = int_to_ptr.vmem [resolvable:$false] %s518_s4 }
  0x27   : > { %p514_p12 = scmp.ne.s32.totalorder %s165_s3, %s513_s8  ;;  %s520_s6 = scalar_lea.vmem %s519_s4, 256 }
  0x28   : > { %p521_p1 = scmp.lt.s32.totalorder %s165_s3, %s519_s4  ;;  %p522_p2 = scmp.lt.s32.totalorder %s520_s6, %s513_s8 }
  0x29   : > { %p516_p6 = pnand %p514_p12, %p474_p3 }
  0x2a   : > { %p523_p4 = por %p522_p2, %p521_p1 }
  0x2b   : > { %p517_p7 = pneg %p516_p6 }
  0x2d   : > { %p524_p10 = pnand %p523_p4, %p517_p7 }
  0x2f   : > { %527 = shalt.err (!%p524_p10)
}
  0x30   : > { %408 = dma.hbm_to_vmem [thread:$0]  (!%p706_p0), %s162_s28, 128, %s165_s3, %s153_s7  }
  0x31   : > { %173 = sbr.rel (%p724_p5) target bundleno = 135 (0x87), region = 28  ;;  %s740_s25 = sand.u32 (!%p724_p5), 1, %s596_s10  }
  0x32   : > { %s743_s26 = sshll.u32 (!%p724_p5), %s740_s25, 3  ;;  %s176_s27 = scalar_lea.sflag (!%p724_p5), [#allocation3], %s740_s25 }
  0x33   : > { %s179_s15 = scalar_lea.vmem (!%p724_p5), [#allocation2], %s743_s26 }
  0x36   : > { %579 = dma.done.wait (%p679_p8), %s176_s27, 128  }
  0x37   : > { %581 = vsyncadd (%p679_p8), %s176_s27, 4294967168  ;;  %s185_s5 = scalar_lea.sflag [#allocation6], %s740_s25  ;;  %s188_s16 = scalar_lea.vmem [#allocation5], %s743_s26 }
  0x38   : > { %583 = dma.done.wait (%p679_p8), %s185_s5, 128  }
  0x39   : > { %585 = vsyncadd (%p679_p8), %s185_s5, 4294967168  ;;  %v219_v0 = vld [vmem:[%s179_s15] sm:$0xff]  ;;  %v220_v8 = vld [vmem:[%s188_s16] sm:$0xff]  ;;  %s393_s21 = sshll.u32 %s604_s12, 7  ;;  %s213_s18 = scalar_lea.vmem [#allocation7], %s743_s26 }
  0x3a   : > { %v221_v1 = vand.u32 2147483647, %v219_v0  ;;  %vm238_vm0 = vcmp.ge.f32.partialorder %v219_v0, 0.0  ;;  %v225_v16 = vmax.f32 %v219_v0, 0.0  ;;  %v226_v17 = vmul.f32 %v220_v8, %v219_v0  ;;  %s277_s19 = sshll.u32 %s213_s18, 4  ;;  %s275_s29 = scalar_lea.hbm %s800_s2, %s393_s21  ;;  %s278_s19 = int_to_ptr.vmem [resolvable:$true] %s277_s19 }
  0x3b   : > { %v244_v18 = vsub.f32 1.0, %v220_v8  ;;  %v243_v22 = vmul.f32 0.25, %v220_v8  ;;  %s264_s3 = scalar_lea.sflag [#allocation4], %s740_s25  ;;  %s528_s7 = scalar_lea.vmem %s278_s19, 128 }
  0x3c   : > { %v222_v2 = vsub.f32 0.0, %v221_v1  ;;  %v227_v21 = vsub.f32 %v225_v16, %v226_v17  ;;  %p529_p8 = scmp.ne.s32.totalorder %s278_s19, %s528_s7  ;;  %s616_s8 = smov [#allocation7]  }
  0x3d   : > { %v245_v23 = vmul.f32 0.75, %v244_v18  ;;  %s532_s30 = sshll.u32 %s616_s8, 4  ;;  %s533_s30 = int_to_ptr.vmem [resolvable:$false] %s532_s30 }
  0x3e   : > { %v223_v3 = vmul.f32 1.442695, %v222_v2  ;;  %p530_p0 = pnand %p529_p8, %p683_p9  ;;  %s534_s4 = scalar_lea.vmem %s533_s30, 256 }
  0x3f   : > { %v246_v26 = vadd.f32 %v245_v23, %v243_v22  ;;  %p535_p13 = scmp.lt.s32.totalorder %s278_s19, %s533_s30  ;;  %p536_p5 = scmp.lt.s32.totalorder %s534_s4, %s528_s7 }
  0x40   : > { %464 = vpow2.f32 %v223_v3  ;;  %p531_p3 = pneg %p530_p0 }
  0x41   : > { %p537_p12 = por %p536_p5, %p535_p13 }
  0x43   : > { %p538_p6 = pnand %p537_p12, %p531_p3 }
  0x4d   : > { %v465_v4 = vpop.eup %464 }
  0x4e   : > { %v228_v5 = vadd.f32 1.0, %v465_v4  ;;  %v239_v6 = vsel %vm238_vm0, 1.0, %v465_v4  ;;  %v231_v11 = vmul.f32 -0.5, %v465_v4  ;;  %v234_v15 = vand.u32 2147483647, %v465_v4 }
  0x50   : > { %466 = vrcp.f32 %v228_v5  ;;  %v232_v13 = vadd.f32 1.0, %v231_v11  ;;  %vm235_vm1 = vcmp.lt.f32.partialorder %v234_v15, 0.0004427343 }
  0x51   : > { %468 = vlog2.f32 %v228_v5 }
  0x52   : > { %v233_v20 = vmul.f32 %v465_v4, %v232_v13 }
  0x5d   : > { %v467_v7 = vpop.eup %466 }
  0x5e   : > { %v242_v9 = vmul.f32 %v467_v7, %v239_v6  ;;  %v469_v14 = vpop.eup %468 }
  0x5f   : > { %v230_v19 = vmul.f32 0.6931472, %v469_v14 }
  0x60   : > { %v247_v10 = vsub.f32 %v220_v8, %v242_v9 }
  0x61   : > { %v236_v24 = vsel %vm235_vm1, %v233_v20, %v230_v19 }
  0x62   : > { %v248_v12 = vand.u32 2147483647, %v247_v10  ;;  %v237_v25 = vadd.f32 %v236_v24, %v227_v21 }
  0x64   : > { %470 = vrsqrt.f32 %v248_v12  ;;  %vm251_vm2 = vcmp.eq.f32.partialorder %v248_v12, inf  ;;  %v254_v28 = vand.u32 2147483648, %v248_v12  ;;  %vm253_vm3 = vcmp.eq.f32.partialorder %v248_v12, 0.0 }
  0x65   : > { %v257_v31 = vmul.f32 %v246_v26, %v237_v25 }
  0x71   : > { %v471_v27 = vpop.eup %470 }
  0x72   : > { %v250_v29 = vmul.f32 %v471_v27, %v248_v12 }
  0x74   : > { %v252_v30 = vsel %vm251_vm2, %v248_v12, %v250_v29 }
  0x75   : > { %v255_v32 = vsel %vm253_vm3, %v254_v28, %v252_v30 }
  0x76   : > { %v256_v33 = vmul.f32 %v255_v32, %v248_v12 }
  0x78   : > { %v258_v34 = vmul.f32 %v257_v31, %v256_v33 }
  0x7a   : > { %262 = vst [vmem:[%s213_s18] sm:$0xff] %v258_v34 }
  0x7b   : > { %541 = shalt.err (!%p538_p6)
}
  0x7c   : > { %s542_s12 = scalar_lea.hbm %s275_s29, 128  ;;  %s546_s26 = scalar_lea.hbm %s800_s2, 256 }
  0x7d   : > { %p543_p7 = scmp.ne.s32.totalorder %s275_s29, %s542_s12  ;;  %p547_p4 = scmp.lt.s32.totalorder %s275_s29, %s800_s2 }
  0x7e   : > { %p548_p10 = scmp.lt.s32.totalorder %s546_s26, %s542_s12 }
  0x7f   : > { %p544_p1 = pnand %p543_p7, %p683_p9 }
  0x80   : > { %p549_p8 = por %p548_p10, %p547_p4 }
  0x81   : > { %p545_p2 = pneg %p544_p1 }
  0x83   : > { %p550_p0 = pnand %p549_p8, %p545_p2 }
  0x85   : > { %553 = shalt.err (!%p550_p0)
}
  0x86   : > { %400 = dma.vmem_to_hbm [thread:$0]  (%p683_p9), %s278_s19, 128, %s275_s29, %s264_s3  }
  0x87 PF: > { %s289_s5 = sand.u32 1, %s592_s9   ;;  %p807_p3 = scmp.ge.s32.totalorder %s612_s14, 2 }
  0x88   : > { %s290_s16 = scalar_lea.sflag [#allocation4], %s289_s5 }
  0x89   : > { %p410_p13 = pnand %p807_p3, %p690_p11 }
  0x8b   : > { %p411_p5 = pneg %p410_p13 }
  0x8d   : > { %587 = dma.done.wait (%p411_p5), %s290_s16, 128  }
  0x8e   : > { %589 = vsyncadd (%p411_p5), %s290_s16, 4294967168  ;;  %s21_s14 = sadd.s32 1, %s612_s14   ;;  %s808_s9 = smov %s596_s10 }
  0x8f   : > { %p18_p12 = scmp.ge.s32.totalorder %s21_s14, 4   ;;  %s809_s10 = smov %s600_s11 }
  0x90   : > { %s810_s11 = smov %s688_s23  ;;  %s811_s12 = smov %s608_s13 }
  0x91   : > { %s812_s13 = smov %s814_s17  ;;  %20 = sbr.rel (!%p18_p12) target bundleno = 8 (0x8), region = 90 }
  0x96   :  { %295 = vsyncpa [#allocation3], 1 }
  0x97   :  { %297 = vsyncpa [#allocation3 + $0x1], 1 }
  0x98   :  { %298 = vsyncpa [#allocation6], 1 }
  0x99   :  { %300 = vsyncpa [#allocation6 + $0x1], 1 }
  0x9a   :  { %301 = vsyncpa [#allocation4], 1 }
  0x9b   :  { %303 = vsyncpa [#allocation4 + $0x1], 1 }

</bundles_post_ra>
